<compile_context>
chip_gen: v7x
topology: tpu7x:2x2x1
jax: 0.10.0
libtpu: 0.0.40
codegen_flags: <defaults>
</compile_context>

<pallas_src>
import functools

import jax
import jax.numpy as jnp
from jax import lax
from jax.experimental import pallas as pl
from jax.experimental.pallas import tpu as pltpu

HIDDEN = 128
NEG_SLOPE = 0.01                 # PyTorch nn.LeakyReLU default
LANE = 128                       # TPU lane width
MAX_BATCH_TILE = 8192            # hard cap on batch lanes per grid step
VMEM_WORKING_BYTES = 24 * 1024 * 1024   # conservative working-set target (v7x: 64 MiB/TC)


def _critic_kernel(x_ref, w1T_ref, b1_ref, w2_ref, b2_ref, o_ref):
    # Layer 1 on the MXU: contract (128, obs) with (tb, obs) over obs -> (128, tb).
    # x is streamed in its natural (B, obs) layout; the transpose happens as part
    # of the MXU contraction, not as an HBM round trip in the wrapper.
    h = lax.dot_general(
        w1T_ref[...], x_ref[...],
        dimension_numbers=(((1,), (1,)), ((), ())),
        preferred_element_type=jnp.float32)
    h = h + b1_ref[...]                           # (128, 1) broadcast over lanes (f32)
    h = jnp.where(h > 0, h, NEG_SLOPE * h)        # LeakyReLU in f32 on the VPU
    # Layer 2 on the MXU: (1, 128) @ (128, tb) -> (1, tb), lane-dense output.
    out = jnp.dot(w2_ref[...], h, preferred_element_type=jnp.float32)
    o_ref[...] = (out + b2_ref[0, 0]).astype(o_ref.dtype)


def _round_up(n: int, m: int) -> int:
    return ((n + m - 1) // m) * m


def _choose_batch_tile(B: int, obs: int, itemsize: int) -> int:
    """Pick a lane-dense batch tile from a per-generation-safe VMEM budget."""
    # Per-lane bytes: double-buffered (tb, obs) x tile, the (128, tb) f32 hidden
    # intermediate, and the double-buffered (1, tb) f32 output tile.
    per_lane = 2 * obs * itemsize + HIDDEN * 4 + 2 * 4
    tb = (VMEM_WORKING_BYTES // per_lane) // LANE * LANE
    tb = max(LANE, min(tb, MAX_BATCH_TILE))
    tb = min(tb, _round_up(B, LANE))              # never larger than (padded) batch
    # Keep at least 2 grid steps for larger batches so the "parallel" batch axis
    # can be sharded across both v7x TensorCores (v5e/v6e: harmless).
    if B > 2 * LANE:
        tb = min(tb, _round_up((B + 1) // 2, LANE))
    return tb


@functools.partial(jax.jit, static_argnames=("input_dtype",))
def critic_forward(x, w1, b1, w2, b2, *, input_dtype=jnp.float32):
    """x: (B, obs) -> (B, 1) float32.

    Params in PyTorch-equivalent orientation: w1 (obs, 128), b1 (1, 128) or (128,),
    w2 (128, 1), b2 (1, 1) or scalar.

    `input_dtype=jnp.bfloat16` halves HBM traffic on the dominant x/W1 streams
    (worth it on v5e/v6e/v7x alike — all math still accumulates in f32 and the
    VPU only ever touches f32).  Note: bf16 inputs round x/W1 before the MXU, so
    outputs differ from the f32 path at ~1e-2 relative error.
    """
    B, obs = x.shape

    xs = x.astype(input_dtype)                            # no transpose; cast only if needed
    w1T = jnp.asarray(w1, input_dtype).T                  # (128, obs)  VMEM-resident
    b1c = jnp.asarray(b1, jnp.float32).reshape(HIDDEN, 1) # (128, 1)    VMEM-resident
    w2r = jnp.asarray(w2, jnp.float32).reshape(1, HIDDEN) # (1, 128)    VMEM-resident
    b2s = jnp.asarray(b2, jnp.float32).reshape(1, 1)      # SMEM scalar

    itemsize = jnp.dtype(input_dtype).itemsize
    tb = _choose_batch_tile(B, obs, itemsize)
    grid = (pl.cdiv(B, tb),)

    cost = pl.CostEstimate(
        flops=2 * B * obs * HIDDEN + 2 * B * HIDDEN,
        transcendentals=0,
        bytes_accessed=(B * obs + HIDDEN * obs) * itemsize
        + (2 * HIDDEN + 1 + B) * 4,
    )

    out = pl.pallas_call(
        _critic_kernel,
        out_shape=jax.ShapeDtypeStruct((1, B), jnp.float32),
        grid_spec=pl.GridSpec(
            grid=grid,
            in_specs=[
                pl.BlockSpec((tb, obs), lambda i: (i, 0)),          # x   (streamed, natural layout)
                pl.BlockSpec((HIDDEN, obs), lambda i: (0, 0)),      # w1T (resident)
                pl.BlockSpec((HIDDEN, 1), lambda i: (0, 0)),        # b1  (resident)
                pl.BlockSpec((1, HIDDEN), lambda i: (0, 0)),        # w2  (resident)
                pl.BlockSpec(memory_space=pltpu.MemorySpace.SMEM),  # b2 scalar
            ],
            out_specs=pl.BlockSpec((1, tb), lambda i: (0, i)),      # lane-dense output
        ),
        compiler_params=pltpu.CompilerParams(
            dimension_semantics=("parallel",),    # shard batch tiles across TCs (v7x)
            vmem_limit_bytes=32 * 1024 * 1024,    # comfortable on v5e/v6e/v7x
        ),
        cost_estimate=cost,
    )(xs, w1T, b1c, w2r, b2s)

    # (1, B) -> (B, 1) via reshape (same element order; avoids an XLA transpose).
    return out.reshape(B, 1)


def init_critic_params(key, observation_size):
    """Deterministic init mimicking PyTorch nn.Linear default (U[-1/sqrt(fan_in), +])."""
    k1, k2, k3, k4 = jax.random.split(key, 4)
    bound1 = 1.0 / jnp.sqrt(observation_size)
    bound2 = 1.0 / jnp.sqrt(HIDDEN)
    w1 = jax.random.uniform(k1, (observation_size, HIDDEN), jnp.float32, -bound1, bound1)
    b1 = jax.random.uniform(k2, (1, HIDDEN), jnp.float32, -bound1, bound1)
    w2 = jax.random.uniform(k3, (HIDDEN, 1), jnp.float32, -bound2, bound2)
    b2 = jax.random.uniform(k4, (1, 1), jnp.float32, -bound2, bound2)
    return w1, b1, w2, b2


def _reference(x, w1, b1, w2, b2):
    h = x @ w1 + b1
    h = jnp.where(h > 0, h, NEG_SLOPE * h)
    return h @ w2 + b2


if __name__ == "__main__":
    batch = 8
    observation_size = 32

    key = jax.random.PRNGKey(0)
    kx, kp, kx2 = jax.random.split(key, 3)
    x = jax.random.normal(kx, (batch, observation_size), jnp.float32)
    w1, b1, w2, b2 = init_critic_params(kp, observation_size)

    # Small-batch f32 path (tight correctness check vs the PyTorch-equivalent reference).
    out = jax.block_until_ready(critic_forward(x, w1, b1, w2, b2))
    ref = _reference(x, w1, b1, w2, b2)
    assert out.shape == (batch, 1)
    assert jnp.allclose(out, ref, atol=1e-5, rtol=1e-5)

    # Ragged / multi-tile batch: exercises grid > 1 and masked padded output lanes.
    ragged_batch = 300
    x2 = jax.random.normal(kx2, (ragged_batch, observation_size), jnp.float32)
    out2 = jax.block_until_ready(critic_forward(x2, w1, b1, w2, b2))
    ref2 = _reference(x2, w1, b1, w2, b2)
    assert out2.shape == (ragged_batch, 1)
    assert jnp.allclose(out2, ref2, atol=1e-5, rtol=1e-5)

    # NOTE: the bf16-input bandwidth path (critic_forward(..., input_dtype=jnp.bfloat16))
    # targets real TPU MXUs; it is not exercised here because interpret/CPU executors
    # lack bf16xbf16->f32 dot support.
    print("KERNEL_OK")
</pallas_src>

<mosaic_0001>
module attributes {stable_mosaic.version = 11 : i64} {
  func.func @_critic_kernel(%arg0: i32, %arg1: memref<128x32xf32, #tpu.memory_space<vmem>>, %arg2: memref<128x32xf32, #tpu.memory_space<vmem>>, %arg3: memref<128x1xf32, #tpu.memory_space<vmem>>, %arg4: memref<1x128xf32, #tpu.memory_space<vmem>>, %arg5: memref<1x1xf32, #tpu.memory_space<smem>>, %arg6: memref<1x128xf32, #tpu.memory_space<vmem>>) attributes {dimension_semantics = [#tpu.dimension_semantics<parallel>], iteration_bounds = array<i64: 1>, scalar_prefetch = 0 : i64, scratch_operands = 0 : i64, tpu.core_type = #tpu.core_type<tc>, window_params = [{transform_indices = @transform_0, window_bounds = array<i64: 128, 32>}, {pipeline_mode = #tpu.pipeline_mode<synchronous>, transform_indices = @transform_1, window_bounds = array<i64: 128, 32>}, {pipeline_mode = #tpu.pipeline_mode<synchronous>, transform_indices = @transform_2, window_bounds = array<i64: 128, 1>}, {pipeline_mode = #tpu.pipeline_mode<synchronous>, transform_indices = @transform_3, window_bounds = array<i64: 1, 128>}, {transform_indices = @transform_4, window_bounds = array<i64: 1, 1>}, {transform_indices = @transform_5, window_bounds = array<i64: 1, 128>}]} {
    %c0 = arith.constant 0 : index
    %c0_0 = arith.constant 0 : index
    %0 = vector.load %arg2[%c0, %c0_0] : memref<128x32xf32, #tpu.memory_space<vmem>>, vector<128x32xf32>
    %c0_1 = arith.constant 0 : index
    %c0_2 = arith.constant 0 : index
    %1 = vector.load %arg1[%c0_1, %c0_2] : memref<128x32xf32, #tpu.memory_space<vmem>>, vector<128x32xf32>
    %cst = arith.constant dense<0.000000e+00> : vector<128x128xf32>
    %2 = tpu.matmul %0, %1, %cst {dimension_numbers = #tpu.dot_dimension_numbers<[1], [1], [0], [0], [0, 0, 1, 0], [], []>} : vector<128x32xf32>, vector<128x32xf32>, vector<128x128xf32> -> vector<128x128xf32>
    %c0_3 = arith.constant 0 : index
    %c0_4 = arith.constant 0 : index
    %3 = vector.load %arg3[%c0_3, %c0_4] : memref<128x1xf32, #tpu.memory_space<vmem>>, vector<128x1xf32>
    %4 = vector.broadcast %3 : vector<128x1xf32> to vector<128x128xf32>
    %5 = arith.addf %2, %4 : vector<128x128xf32>
    %cst_5 = arith.constant 0.000000e+00 : f32
    %6 = vector.broadcast %cst_5 : f32 to vector<128x128xf32>
    %7 = arith.cmpf ogt, %5, %6 : vector<128x128xf32>
    %cst_6 = arith.constant 0.00999999977 : f32
    %8 = vector.broadcast %cst_6 : f32 to vector<128x128xf32>
    %9 = arith.mulf %8, %5 : vector<128x128xf32>
    %10 = arith.select %7, %5, %9 : vector<128x128xi1>, vector<128x128xf32>
    %c0_7 = arith.constant 0 : index
    %c0_8 = arith.constant 0 : index
    %11 = vector.load %arg4[%c0_7, %c0_8] : memref<1x128xf32, #tpu.memory_space<vmem>>, vector<1x128xf32>
    %cst_9 = arith.constant dense<0.000000e+00> : vector<1x128xf32>
    %12 = tpu.matmul %11, %10, %cst_9 {dimension_numbers = #tpu.dot_dimension_numbers<[1], [0], [0], [1], [0, 0, 1, 1], [], []>} : vector<1x128xf32>, vector<128x128xf32>, vector<1x128xf32> -> vector<1x128xf32>
    %c0_10 = arith.constant 0 : index
    %c0_11 = arith.constant 0 : index
    %13 = memref.load %arg5[%c0_10, %c0_11] : memref<1x1xf32, #tpu.memory_space<smem>>
    %14 = vector.broadcast %13 : f32 to vector<1x128xf32>
    %15 = arith.addf %12, %14 : vector<1x128xf32>
    %c0_12 = arith.constant 0 : index
    %c0_13 = arith.constant 0 : index
    %16 = vector.load %arg6[%c0_12, %c0_13] : memref<1x128xf32, #tpu.memory_space<vmem>>, vector<1x128xf32>
    tpu.vector_store %arg6[%c0_12, %c0_13], %15 {strides = array<i32>} : memref<1x128xf32, #tpu.memory_space<vmem>>, vector<1x128xf32>,
    return
  }
  func.func @transform_0(%arg0: i32) -> (i32, i32) {
    %c0_i32 = arith.constant 0 : i32
    %c0_i32_0 = arith.constant 0 : i32
    return %arg0, %c0_i32 : i32, i32
  }
  func.func @transform_1(%arg0: i32) -> (i32, i32) {
    %c0_i32 = arith.constant 0 : i32
    %c0_i32_0 = arith.constant 0 : i32
    %c0_i32_1 = arith.constant 0 : i32
    return %c0_i32, %c0_i32_0 : i32, i32
  }
  func.func @transform_2(%arg0: i32) -> (i32, i32) {
    %c0_i32 = arith.constant 0 : i32
    %c0_i32_0 = arith.constant 0 : i32
    %c0_i32_1 = arith.constant 0 : i32
    return %c0_i32, %c0_i32_0 : i32, i32
  }
  func.func @transform_3(%arg0: i32) -> (i32, i32) {
    %c0_i32 = arith.constant 0 : i32
    %c0_i32_0 = arith.constant 0 : i32
    %c0_i32_1 = arith.constant 0 : i32
    return %c0_i32, %c0_i32_0 : i32, i32
  }
  func.func @transform_4(%arg0: i32) -> (i32, i32) {
    %c0_i32 = arith.constant 0 : i32
    %c0_i32_0 = arith.constant 0 : i32
    %c0_i32_1 = arith.constant 0 : i32
    return %c0_i32, %c0_i32_0 : i32, i32
  }
  func.func @transform_5(%arg0: i32) -> (i32, i32) {
    %c0_i32 = arith.constant 0 : i32
    %c0_i32_0 = arith.constant 0 : i32
    return %c0_i32, %arg0 : i32, i32
  }
}

</mosaic_0001>

<bundles_post_ra>
// kernel: critic_forward.1
= control target key start
LH: loop header
LB: loop body
LE: loop exit
PB: predicated region body
PF: predicated region fallthrough
CT: control target
= control target key end

     0   :  { %vm150_vm0 = vcmask 261120   ;;  %v803_v6 = vmov 0   ;;  %s1062_s0 = inlined_call_operand.vmem [shape: f32[8,32], index: 0, kind: input, shape index: {}]   ;;  %s1063_s1 = inlined_call_operand.vmem [shape: f32[128,32], index: 1, kind: input, shape index: {}]   ;;  %s1064_s2 = inlined_call_operand.vmem [shape: f32[128,1], index: 2, kind: input, shape index: {}]   ;;  %s1065_s3 = inlined_call_operand.vmem [shape: f32[1,128], index: 3, kind: input, shape index: {}]   ;;  %s1066_s4 = inlined_call_operand.<no memory space> [shape: f32[1,1], index: 4, kind: input, shape index: {}]   ;;  %s1067_s5 = inlined_call_operand.hbm [shape: f32[1,8], index: 5, kind: output, shape index: {}]  }
   0x1   :  { %v38_v0 = vld [vmem:[%s1062_s0] sm:$0xff]  ;;  %v39_v1 = vld [vmem:[%s1062_s0 + $0x8] sm:$0xff]  ;;  %v40_v2 = vld [vmem:[%s1062_s0 + $0x10] sm:$0xff]  ;;  %777 = vset.pattern.permute.xlu0 %v803_v6  ;;  %778 = vset.pattern.permute.xlu1 %v803_v6 }
   0x2   :  { %v700_v3 = vpack.c.bf16 %v39_v1, %v38_v0  ;;  %vm849_vm1 = vmpackc.low %vm150_vm0, %vm150_vm0  ;;  %v41_v5 = vld [vmem:[%s1062_s0 + $0x18] sm:$0xff]  ;;  %v22_v8 = vld [vmem:[%s1063_s1] sm:$0xff] }
   0x3   :  { %v706_v7 = vpack.c.bf16 %v41_v5, %v40_v2  ;;  %v42_v9 = vld [vmem:[%s1062_s0 + $0x20] sm:$0xff]  ;;  %v43_v10 = vld [vmem:[%s1062_s0 + $0x28] sm:$0xff]  ;;  %641 = vmatprep.mubr.msk.f32.mxu0 %vm150_vm0, %v22_v8  ;;  %v56_v13 = vld [vmem:[%s1064_s2 + $0x10] sm:$0xff] }
   0x4   :  { %702 = vmatprep.subr.msk.bf16.mxu0 %vm849_vm1, %v700_v3  ;;  %v712_v11 = vpack.c.bf16 %v43_v10, %v42_v9  ;;  %v54_v12 = vld [vmem:[%s1064_s2] sm:$0xff]  ;;  %82 = vperm.xlu1 %778, %v56_v13   ;;  %v55_v14 = vld [vmem:[%s1064_s2 + $0x8] sm:$0xff]  ;;  %v44_v15 = vld [vmem:[%s1062_s0 + $0x30] sm:$0xff] }
   0x5   :  { %705 = vmatpush3.bf16.xpose.msk.msra.mxu0 %vm849_vm1, %v700_v3  ;;  %72 = vperm.xlu0 %777, %v54_v12   ;;  %v45_v16 = vld [vmem:[%s1062_s0 + $0x38] sm:$0xff] }
   0x6   :  { %708 = vmatprep.subr.msk.bf16.mxu0 %vm849_vm1, %v706_v7  ;;  %v57_v17 = vld [vmem:[%s1064_s2 + $0x18] sm:$0xff] }
   0x9   :  { %77 = vperm.xlu0 %777, %v55_v14  }
   0xd   :  { %711 = vmatpush3.bf16.xpose.msk.msra.mxu0 %vm849_vm1, %v706_v7 }
   0xe   :  { %714 = vmatprep.subr.msk.bf16.mxu0 %vm849_vm1, %v712_v11 }
   0xf   :  { %11 = vsyncpa [#allocation4], 0  ;;  %v718_v18 = vpack.c.bf16 %v45_v16, %v44_v15  ;;  %87 = vperm.xlu1 %778, %v57_v17   ;;  %v58_v19 = vld [vmem:[%s1064_s2 + $0x20] sm:$0xff]  ;;  %v59_v20 = vld [vmem:[%s1064_s2 + $0x28] sm:$0xff]  ;;  %v804_v58 = vmov 0.0|0.0   ;;  %vm805_vm2 = vmmov 0  }
  0x10   :  { %92 = vperm.xlu0 %777, %v58_v19   ;;  %v60_v21 = vld [vmem:[%s1064_s2 + $0x30] sm:$0xff]  ;;  %v46_v22 = vld [vmem:[%s1062_s0 + $0x40] sm:$0xff]  ;;  %v47_v23 = vld [vmem:[%s1062_s0 + $0x48] sm:$0xff]  ;;  %748 = vmatprep.subr.bf16.mxu1 %v804_v58  ;;  %v806_v59 = vmov 0.0   ;;  %s807_s13 = smov [#allocation3]  }
  0x11   :  { %v61_v24 = vld [vmem:[%s1064_s2 + $0x38] sm:$0xff]  ;;  %v724_v25 = vpack.c.bf16 %v47_v23, %v46_v22  ;;  %v62_v26 = vld [vmem:[%s1064_s2 + $0x40] sm:$0xff]  ;;  %v63_v27 = vld [vmem:[%s1064_s2 + $0x48] sm:$0xff]  ;;  %697 = vmatprep.mubr.msk.f32.mxu1 %vm805_vm2, %v806_v59  ;;  %s520_s14 = sshll.u32 %s807_s13, 4  ;;  %s521_s14 = int_to_ptr.vmem [resolvable:$true] %s520_s14 }
  0x12   :  { %v64_v28 = vld [vmem:[%s1064_s2 + $0x50] sm:$0xff]  ;;  %v49_v30 = vld [vmem:[%s1062_s0 + $0x58] sm:$0xff]  ;;  %v66_v33 = vld [vmem:[%s1064_s2 + $0x60] sm:$0xff]  ;;  %s779_s15 = scalar_lea.vmem %s521_s14, 16  ;;  %s783_s16 = scalar_lea.vmem %s521_s14, 32 }
  0x13   :  { %97 = vperm.xlu1 %778, %v59_v20   ;;  %v48_v29 = vld [vmem:[%s1062_s0 + $0x50] sm:$0xff]  ;;  %v65_v31 = vld [vmem:[%s1064_s2 + $0x58] sm:$0xff]  ;;  %v67_v34 = vld [vmem:[%s1064_s2 + $0x68] sm:$0xff]  ;;  %p780_p0 = scmp.ne.s32.totalorder %s521_s14, %s779_s15  ;;  %p784_p1 = scmp.lt.s32.totalorder %s521_s14, %s521_s14 }
  0x14   :  { %102 = vperm.xlu0 %777, %v60_v21   ;;  %v730_v32 = vpack.c.bf16 %v49_v30, %v48_v29  ;;  %v68_v35 = vld [vmem:[%s1064_s2 + $0x70] sm:$0xff]  ;;  %v50_v36 = vld [vmem:[%s1062_s0 + $0x60] sm:$0xff]  ;;  %v51_v37 = vld [vmem:[%s1062_s0 + $0x68] sm:$0xff]  ;;  %p785_p2 = scmp.lt.s32.totalorder %s783_s16, %s779_s15 }
  0x15   :  { %717 = vmatpush3.bf16.xpose.msk.msra.mxu0 %vm849_vm1, %v712_v11  ;;  %v69_v38 = vld [vmem:[%s1064_s2 + $0x78] sm:$0xff]  ;;  %v736_v39 = vpack.c.bf16 %v51_v37, %v50_v36  ;;  %v52_v40 = vld [vmem:[%s1062_s0 + $0x70] sm:$0xff]  ;;  %v23_v43 = vld [vmem:[%s1063_s1 + $0x8] sm:$0xff] }
  0x16   :  { %720 = vmatprep.subr.msk.bf16.mxu0 %vm849_vm1, %v718_v18  ;;  %v53_v41 = vld [vmem:[%s1062_s0 + $0x78] sm:$0xff]  ;;  %v24_v44 = vld [vmem:[%s1063_s1 + $0x10] sm:$0xff]  ;;  %v26_v46 = vld [vmem:[%s1063_s1 + $0x20] sm:$0xff]  ;;  %p786_p3 = por %p785_p2, %p784_p1 }
  0x17   :  { %107 = vperm.xlu1 %778, %v61_v24   ;;  %v742_v42 = vpack.c.bf16 %v53_v41, %v52_v40  ;;  %v25_v45 = vld [vmem:[%s1063_s1 + $0x18] sm:$0xff]  ;;  %v27_v47 = vld [vmem:[%s1063_s1 + $0x28] sm:$0xff]  ;;  %v28_v48 = vld [vmem:[%s1063_s1 + $0x30] sm:$0xff] }
  0x18   :  { %112 = vperm.xlu0 %777, %v62_v26   ;;  %v29_v49 = vld [vmem:[%s1063_s1 + $0x38] sm:$0xff]  ;;  %v30_v50 = vld [vmem:[%s1063_s1 + $0x40] sm:$0xff]  ;;  %v31_v51 = vld [vmem:[%s1063_s1 + $0x48] sm:$0xff]  ;;  %p787_p4 = pnand %p786_p3, %p780_p0 }
  0x19   :  { %v32_v52 = vld [vmem:[%s1063_s1 + $0x50] sm:$0xff]  ;;  %v33_v53 = vld [vmem:[%s1063_s1 + $0x58] sm:$0xff]  ;;  %v34_v54 = vld [vmem:[%s1063_s1 + $0x60] sm:$0xff] }
  0x1a   :  { %v35_v55 = vld [vmem:[%s1063_s1 + $0x68] sm:$0xff]  ;;  %v36_v56 = vld [vmem:[%s1063_s1 + $0x70] sm:$0xff]  ;;  %v37_v57 = vld [vmem:[%s1063_s1 + $0x78] sm:$0xff] }
  0x1b   :  { %117 = vperm.xlu1 %778, %v63_v27  }
  0x1c   :  { %122 = vperm.xlu0 %777, %v64_v28  }
  0x1d   :  { %723 = vmatpush3.bf16.xpose.msk.msra.mxu0 %vm849_vm1, %v718_v18 }
  0x1e   :  { %726 = vmatprep.subr.msk.bf16.mxu0 %vm849_vm1, %v724_v25 }
  0x1f   :  { %127 = vperm.xlu1 %778, %v65_v31  }
  0x20   :  { %132 = vperm.xlu0 %777, %v66_v33  }
  0x23   :  { %137 = vperm.xlu1 %778, %v67_v34  }
  0x24   :  { %142 = vperm.xlu0 %777, %v68_v35  }
  0x25   :  { %729 = vmatpush3.bf16.xpose.msk.msra.mxu0 %vm849_vm1, %v724_v25 }
  0x26   :  { %732 = vmatprep.subr.msk.bf16.mxu0 %vm849_vm1, %v730_v32 }
  0x27   :  { %147 = vperm.xlu1 %778, %v69_v38  }
  0x2d   :  { %735 = vmatpush3.bf16.xpose.msk.msra.mxu0 %vm849_vm1, %v730_v32 }
  0x2e   :  { %738 = vmatprep.subr.msk.bf16.mxu0 %vm849_vm1, %v736_v39 }
  0x35   :  { %741 = vmatpush3.bf16.xpose.msk.msra.mxu0 %vm849_vm1, %v736_v39 }
  0x36   :  { %744 = vmatprep.subr.msk.bf16.mxu0 %vm849_vm1, %v742_v42 }
  0x3d   :  { %747 = vmatpush3.bf16.xpose.msk.msra.mxu0 %vm849_vm1, %v742_v42 }
  0x44   :  { %642 = vmatmul.mubr.msk.f32.vlgmr.msra.gmra.mrb[0].mxu0 %vm150_vm0, %v23_v43 }
  0x45   :  { %644 = vmatprep.mubr.msk.f32.mxu0 %vm150_vm0, %v24_v44 }
  0x48   :  { %645 = vmatmul.mubr.msk.f32.gmra.mrb[2].mxu0 %vm150_vm0, %v25_v45 }
  0x49   :  { %647 = vmatprep.mubr.msk.f32.mxu0 %vm150_vm0, %v26_v46 }
  0x4c   :  { %648 = vmatmul.mubr.msk.f32.gmra.mrb[4].mxu0 %vm150_vm0, %v27_v47 }
  0x4d   :  { %650 = vmatprep.mubr.msk.f32.mxu0 %vm150_vm0, %v28_v48 }
  0x50   :  { %651 = vmatmul.mubr.msk.f32.gmra.mrb[6].mxu0 %vm150_vm0, %v29_v49 }
  0x51   :  { %653 = vmatprep.mubr.msk.f32.mxu0 %vm150_vm0, %v30_v50 }
  0x54   :  { %654 = vmatmul.mubr.msk.f32.gmra.mrb[8].mxu0 %vm150_vm0, %v31_v51 }
  0x55   :  { %656 = vmatprep.mubr.msk.f32.mxu0 %vm150_vm0, %v32_v52 }
  0x58   :  { %657 = vmatmul.mubr.msk.f32.gmra.mrb[10].mxu0 %vm150_vm0, %v33_v53 }
  0x59   :  { %659 = vmatprep.mubr.msk.f32.mxu0 %vm150_vm0, %v34_v54 }
  0x5c   :  { %660 = vmatmul.mubr.msk.f32.gmra.mrb[12].mxu0 %vm150_vm0, %v35_v55 }
  0x5d   :  { %662 = vmatprep.mubr.msk.f32.mxu0 %vm150_vm0, %v36_v56 }
  0x60   :  { %663 = vmatmul.mubr.msk.f32.gmra.mrb[14].mxu0 %vm150_vm0, %v37_v57 }
  0x83   :  { %v83_v60 = vpop.permute.xlu1 %82 }
  0x84   :  { %v73_v61 = vpop.permute.xlu0 %72 }
  0x88   :  { %v78_v63 = vpop.permute.xlu0 %77 }
  0x8e   :  { %v88_v62 = vpop.permute.xlu1 %87 }
  0x8f   :  { %v93_v1 = vpop.permute.xlu0 %92 }
  0x92   :  { %v98_v0 = vpop.permute.xlu1 %97 }
  0x93   :  { %v103_v10 = vpop.permute.xlu0 %102 }
  0x96   :  { %v108_v7 = vpop.permute.xlu1 %107 }
  0x97   :  { %v113_v26 = vpop.permute.xlu0 %112 }
  0x9a   :  { %v118_v23 = vpop.permute.xlu1 %117 }
  0x9b   :  { %v123_v41 = vpop.permute.xlu0 %122 }
  0x9e   :  { %v128_v38 = vpop.permute.xlu1 %127 }
  0x9f   :  { %v133_v57 = vpop.permute.xlu0 %132 }
  0xa2   :  { %v138_v54 = vpop.permute.xlu1 %137 }
 0x117   :  { %v643_v2 = vpop.f32.mrb[0].mxu0 }
 0x118   :  { %v319_v3 = vadd.f32 %v643_v2, %v78_v63  ;;  %v313_v4 = vpop.f32.mrb[1].mxu0 }
 0x119   :  { %v314_v5 = vadd.f32 %v313_v4, %v73_v61 }
 0x11a   :  { %v409_v6 = vmul.f32 0.01, %v319_v3  ;;  %vm393_vm3 = vcmp.gt.f32.partialorder %v319_v3, 0.0 }
 0x11b   :  { %v408_v8 = vmul.f32 0.01, %v314_v5  ;;  %v646_v9 = vpop.f32.mrb[2].mxu0  ;;  %vm392_vm4 = vcmp.gt.f32.partialorder %v314_v5, 0.0 }
 0x11c   :  { %v329_v11 = vadd.f32 %v646_v9, %v88_v62  ;;  %v323_v12 = vpop.f32.mrb[3].mxu0  ;;  %v425_v13 = vsel %vm393_vm3, %v319_v3, %v409_v6  ;;  %v148_v6 = vpop.permute.xlu1 %147 }
 0x11d   :  { %v324_v14 = vadd.f32 %v323_v12, %v83_v60  ;;  %v424_v15 = vsel %vm392_vm4, %v314_v5, %v408_v8  ;;  %v143_v9 = vpop.permute.xlu0 %142 }
 0x11e   :  { %vm395_vm5 = vcmp.gt.f32.partialorder %v329_v11, 0.0  ;;  %v411_v16 = vmul.f32 0.01, %v329_v11  ;;  %v749_v17 = vpack.c.bf16 %v425_v13, %v424_v15 }
 0x11f   :  { %vm394_vm6 = vcmp.gt.f32.partialorder %v324_v14, 0.0  ;;  %v410_v18 = vmul.f32 0.01, %v324_v14  ;;  %v649_v19 = vpop.f32.mrb[4].mxu0 }
 0x120   :  { %v339_v20 = vadd.f32 %v649_v19, %v98_v0  ;;  %v333_v21 = vpop.f32.mrb[5].mxu0  ;;  %750 = vmatpush3.bf16.msra.mxu1 %v749_v17  ;;  %v427_v22 = vsel %vm395_vm5, %v329_v11, %v411_v16 }
 0x121   :  { %v334_v24 = vadd.f32 %v333_v21, %v93_v1  ;;  %751 = vmatprep.subr.bf16.mxu1 %v804_v58  ;;  %v426_v25 = vsel %vm394_vm6, %v324_v14, %v410_v18  ;;  %v440_v21 = vld [vmem:[%s1065_s3] sm:$0x1] }
 0x122   :  { %vm397_vm7 = vcmp.gt.f32.partialorder %v339_v20, 0.0  ;;  %v413_v27 = vmul.f32 0.01, %v339_v20  ;;  %v752_v28 = vpack.c.bf16 %v427_v22, %v426_v25  ;;  %v442_v22 = vstv %s1066_s4 }
 0x123   :  { %vm396_vm8 = vcmp.gt.f32.partialorder %v334_v24, 0.0  ;;  %v412_v29 = vmul.f32 0.01, %v334_v24  ;;  %v652_v30 = vpop.f32.mrb[6].mxu0 }
 0x124   :  { %v349_v31 = vadd.f32 %v652_v30, %v108_v7  ;;  %v343_v32 = vpop.f32.mrb[7].mxu0  ;;  %753 = vmatpush3.bf16.msra.mxu1 %v752_v28  ;;  %v429_v33 = vsel %vm397_vm7, %v339_v20, %v413_v27 }
 0x125   :  { %v344_v34 = vadd.f32 %v343_v32, %v103_v10  ;;  %754 = vmatprep.subr.bf16.mxu1 %v804_v58  ;;  %v428_v35 = vsel %vm396_vm8, %v334_v24, %v412_v29 }
 0x126   :  { %vm399_vm9 = vcmp.gt.f32.partialorder %v349_v31, 0.0  ;;  %v415_v36 = vmul.f32 0.01, %v349_v31  ;;  %v755_v37 = vpack.c.bf16 %v429_v33, %v428_v35 }
 0x127   :  { %vm398_vm10 = vcmp.gt.f32.partialorder %v344_v34, 0.0  ;;  %v414_v39 = vmul.f32 0.01, %v344_v34  ;;  %v655_v40 = vpop.f32.mrb[8].mxu0 }
 0x128   :  { %v359_v42 = vadd.f32 %v655_v40, %v118_v23  ;;  %v353_v43 = vpop.f32.mrb[9].mxu0  ;;  %756 = vmatpush3.bf16.msra.mxu1 %v755_v37  ;;  %v431_v44 = vsel %vm399_vm9, %v349_v31, %v415_v36 }
 0x129   :  { %v354_v45 = vadd.f32 %v353_v43, %v113_v26  ;;  %757 = vmatprep.subr.bf16.mxu1 %v804_v58  ;;  %v430_v46 = vsel %vm398_vm10, %v344_v34, %v414_v39 }
 0x12a   :  { %vm401_vm11 = vcmp.gt.f32.partialorder %v359_v42, 0.0  ;;  %v417_v47 = vmul.f32 0.01, %v359_v42  ;;  %v758_v48 = vpack.c.bf16 %v431_v44, %v430_v46 }
 0x12b   :  { %vm400_vm12 = vcmp.gt.f32.partialorder %v354_v45, 0.0  ;;  %v416_v49 = vmul.f32 0.01, %v354_v45  ;;  %v658_v50 = vpop.f32.mrb[10].mxu0 }
 0x12c   :  { %v369_v51 = vadd.f32 %v658_v50, %v128_v38  ;;  %v363_v52 = vpop.f32.mrb[11].mxu0  ;;  %759 = vmatpush3.bf16.msra.mxu1 %v758_v48  ;;  %v433_v53 = vsel %vm401_vm11, %v359_v42, %v417_v47 }
 0x12d   :  { %v364_v55 = vadd.f32 %v363_v52, %v123_v41  ;;  %760 = vmatprep.subr.bf16.mxu1 %v804_v58  ;;  %v432_v56 = vsel %vm400_vm12, %v354_v45, %v416_v49 }
 0x12e   :  { %vm403_vm13 = vcmp.gt.f32.partialorder %v369_v51, 0.0  ;;  %v419_v59 = vmul.f32 0.01, %v369_v51  ;;  %v761_v60 = vpack.c.bf16 %v433_v53, %v432_v56 }
 0x12f   :  { %vm402_vm14 = vcmp.gt.f32.partialorder %v364_v55, 0.0  ;;  %v418_v61 = vmul.f32 0.01, %v364_v55  ;;  %v661_v62 = vpop.f32.mrb[12].mxu0 }
 0x130   :  { %v379_v63 = vadd.f32 %v661_v62, %v138_v54  ;;  %v373_v0 = vpop.f32.mrb[13].mxu0  ;;  %762 = vmatpush3.bf16.msra.mxu1 %v761_v60  ;;  %v435_v1 = vsel %vm403_vm13, %v369_v51, %v419_v59 }
 0x131   :  { %v374_v2 = vadd.f32 %v373_v0, %v133_v57  ;;  %763 = vmatprep.subr.bf16.mxu1 %v804_v58  ;;  %v434_v3 = vsel %vm402_vm14, %v364_v55, %v418_v61 }
 0x132   :  { %vm405_vm15 = vcmp.gt.f32.partialorder %v379_v63, 0.0  ;;  %v421_v4 = vmul.f32 0.01, %v379_v63  ;;  %v764_v5 = vpack.c.bf16 %v435_v1, %v434_v3 }
 0x133   :  { %vm404_vm0 = vcmp.gt.f32.partialorder %v374_v2, 0.0  ;;  %v420_v7 = vmul.f32 0.01, %v374_v2  ;;  %v664_v8 = vpop.f32.mrb[14].mxu0 }
 0x134   :  { %v389_v10 = vadd.f32 %v664_v8, %v148_v6  ;;  %v383_v11 = vpop.f32.mrb[15].mxu0  ;;  %765 = vmatpush3.bf16.msra.mxu1 %v764_v5  ;;  %v437_v12 = vsel %vm405_vm15, %v379_v63, %v421_v4 }
 0x135   :  { %v384_v13 = vadd.f32 %v383_v11, %v143_v9  ;;  %766 = vmatprep.subr.bf16.mxu1 %v804_v58  ;;  %v436_v14 = vsel %vm404_vm0, %v374_v2, %v420_v7 }
 0x136   :  { %vm407_vm1 = vcmp.gt.f32.partialorder %v389_v10, 0.0  ;;  %v423_v15 = vmul.f32 0.01, %v389_v10  ;;  %v767_v16 = vpack.c.bf16 %v437_v12, %v436_v14 }
 0x137   :  { %vm406_vm2 = vcmp.gt.f32.partialorder %v384_v13, 0.0  ;;  %v422_v17 = vmul.f32 0.01, %v384_v13 }
 0x138   :  { %768 = vmatpush3.bf16.msra.mxu1 %v767_v16  ;;  %v439_v18 = vsel %vm407_vm1, %v389_v10, %v423_v15 }
 0x139   :  { %769 = vmatprep.subr.bf16.mxu1 %v804_v58  ;;  %v438_v19 = vsel %vm406_vm2, %v384_v13, %v422_v17 }
 0x13a   :  { %v770_v20 = vpack.c.bf16 %v439_v18, %v438_v19 }
 0x13c   :  { %771 = vmatpush3.bf16.msra.mxu1 %v770_v20 }
 0x13f   :  { %698 = vmatmul.mubr.f32.vlgmr.msra.gmra.mrb[0].mxu1 %v440_v21 }
 0x212   :  { %v509_v23 = vpop.f32.mrb[0].mxu1 }
 0x213   :  { %v510_v24 = vadd.f32 %v509_v23, %v442_v22  ;;  %v699_v25 = vpop.f32.mrb[1].mxu1 }
 0x215   :  { %513 = vst [vmem:[#allocation3] sm:$0x1] %v510_v24 }
 0x216   :  { %790 = shalt.err (!%p787_p4)
}
 0x217   :  { %s791_s18 = scalar_lea.hbm %s1067_s5, 16 }
 0x218   :  { %p792_p5 = scmp.ne.s32.totalorder %s1067_s5, %s791_s18  ;;  %p795_p6 = scmp.lt.u32.totalorder %s791_s18, %s1067_s5 }
 0x21a   :  { %p797_p7 = pnand %p795_p6, %p792_p5 }
 0x21c   :  { %800 = shalt.err (!%p797_p7)
}
 0x21d   :  { %523 = dma.vmem_to_hbm [thread:$0]  %s521_s14, 16, %s1067_s5, [#allocation4]  }
 0x21e   :  { %801 = dma.done.wait [#allocation4], 16  }
 0x21f   :  { %802 = vsyncadd [#allocation4], 4294967280 }
 0x220   :  { %527 = vsyncpa [#allocation4], 1 }

</bundles_post_ra>
